<compile_context>
chip_gen: v7x
topology: tpu7x:2x2x1
jax: 0.10.0
libtpu: 0.0.40
codegen_flags: <defaults>
</compile_context>

<pallas_src>
from functools import partial

import jax
import jax.numpy as jnp
from jax.experimental import pallas as pl
from jax.experimental.pallas import tpu as pltpu


def _round_up(x, m):
    return ((x + m - 1) // m) * m


def _mlp_kernel(x_ref, w1_ref, b1_ref, w2_ref, b2_ref, w3_ref, b3_ref, o_ref):
    # x arrives as f32 straight from HBM; cast to bf16 on the VPU for the MXU.
    x = x_ref[...].astype(jnp.bfloat16)
    # fc1 + ReLU   (bf16 operands -> f32 MXU accumulation; elementwise in f32)
    h = jnp.dot(x, w1_ref[...], preferred_element_type=jnp.float32)
    h = jnp.maximum(h + b1_ref[...], 0.0).astype(jnp.bfloat16)
    # fc2 + ReLU
    h = jnp.dot(h, w2_ref[...], preferred_element_type=jnp.float32)
    h = jnp.maximum(h + b2_ref[...], 0.0).astype(jnp.bfloat16)
    # fc3 (logits, no activation)
    out = jnp.dot(h, w3_ref[...], preferred_element_type=jnp.float32) + b3_ref[...]
    o_ref[...] = out.astype(o_ref.dtype)


def prepare_params(w1, b1, w2, b2, w3, b3):
    """One-time weight prep (outside the per-call jit): lane-pad hidden/output
    dims to multiples of 128 and cast matmul operands to bf16.  Biases stay
    f32 (VPU adds).  Zero padding is mathematically inert."""
    in_size, n_hidden = w1.shape
    out_size = w3.shape[1]
    H = _round_up(n_hidden, 128)   # 32 -> 128
    O = _round_up(out_size, 128)   # 10 -> 128
    w1p = jnp.pad(w1, ((0, 0), (0, H - n_hidden))).astype(jnp.bfloat16)
    b1p = jnp.pad(b1, ((0, 0), (0, H - n_hidden)))
    w2p = jnp.pad(w2, ((0, H - n_hidden), (0, H - n_hidden))).astype(jnp.bfloat16)
    b2p = jnp.pad(b2, ((0, 0), (0, H - n_hidden)))
    w3p = jnp.pad(w3, ((0, H - n_hidden), (0, O - out_size))).astype(jnp.bfloat16)
    b3p = jnp.pad(b3, ((0, 0), (0, O - out_size)))
    return w1p, b1p, w2p, b2p, w3p, b3p


@partial(jax.jit, static_argnames=("out_size",))
def mlp_forward(x_nchw, w1p, b1p, w2p, b2p, w3p, b3p, *, out_size):
    """x_nchw: (B, 1, 28, 28) float32.  w*p/b*p come from prepare_params()."""
    in_size = w1p.shape[0]     # 784
    H = w1p.shape[1]           # 128 (padded hidden)
    O = w3p.shape[1]           # 128 (padded output)

    x = x_nchw.reshape(-1, in_size)   # == torch .view(-1, 28*28)
    B = x.shape[0]

    # Batch tile: bf16-sublane friendly (x16), capped at 512 rows; force >= 2
    # grid steps when there is enough work so both v7x TensorCores get a share.
    TB = min(512, _round_up(B, 16))
    if B >= 32:
        TB = min(TB, _round_up((B + 1) // 2, 16))
    Bp = _round_up(B, TB)

    # Only batch rows are padded; the 784 contraction dim is left as-is.
    xp = jnp.pad(x, ((0, Bp - B), (0, 0)))

    # Weights/biases: constant block index -> DMA'd once, stay VMEM-resident.
    resident = lambda shape: pl.BlockSpec(shape, lambda i: (0,) * len(shape))

    flops = 2 * Bp * (in_size * H + H * H + H * O)
    bytes_accessed = (
        Bp * in_size * 4                                   # x (f32)
        + (w1p.size + w2p.size + w3p.size) * 2             # weights (bf16)
        + (b1p.size + b2p.size + b3p.size) * 4             # biases (f32)
        + Bp * O * 4                                       # logits (f32)
    )

    out = pl.pallas_call(
        _mlp_kernel,
        out_shape=jax.ShapeDtypeStruct((Bp, O), jnp.float32),
        grid=(Bp // TB,),
        in_specs=[
            pl.BlockSpec((TB, in_size), lambda i: (i, 0)),  # x: tiled over batch
            resident((in_size, H)),                         # w1
            resident((1, H)),                               # b1
            resident((H, H)),                               # w2
            resident((1, H)),                               # b2
            resident((H, O)),                               # w3
            resident((1, O)),                               # b3
        ],
        out_specs=pl.BlockSpec((TB, O), lambda i: (i, 0)),
        compiler_params=pltpu.CompilerParams(
            dimension_semantics=("parallel",)),             # megacore on v7x
        cost_estimate=pl.CostEstimate(
            flops=flops, bytes_accessed=bytes_accessed, transcendentals=0),
    )(xp, w1p, b1p, w2p, b2p, w3p, b3p)

    return out[:B, :out_size]


def init_params(key, input_size, n_hidden, output_size):
    """Deterministic init matching nn.Linear's U(-1/sqrt(fan_in), 1/sqrt(fan_in)).

    Weights are stored transposed, i.e. shape (in_features, out_features).
    """
    keys = jax.random.split(key, 6)

    def linear(kw, kb, fan_in, fan_out):
        bound = 1.0 / jnp.sqrt(fan_in)
        w = jax.random.uniform(kw, (fan_in, fan_out), jnp.float32, -bound, bound)
        b = jax.random.uniform(kb, (1, fan_out), jnp.float32, -bound, bound)
        return w, b

    w1, b1 = linear(keys[0], keys[1], input_size, n_hidden)
    w2, b2 = linear(keys[2], keys[3], n_hidden, n_hidden)
    w3, b3 = linear(keys[4], keys[5], n_hidden, output_size)
    return w1, b1, w2, b2, w3, b3


if __name__ == "__main__":
    INPUT_SIZE = 28 * 28   # forward hard-codes view(-1, 28*28)
    N_HIDDEN = 32
    OUTPUT_SIZE = 10
    BATCH = 2

    key = jax.random.PRNGKey(0)
    k_x, k_p = jax.random.split(key)

    # Input in PyTorch NCHW convention: (B, 1, 28, 28)
    x = jax.random.normal(k_x, (BATCH, 1, 28, 28), dtype=jnp.float32)
    params = init_params(k_p, INPUT_SIZE, N_HIDDEN, OUTPUT_SIZE)
    prepped = prepare_params(*params)   # one-time pad + bf16 cast

    out = mlp_forward(x, *prepped, out_size=OUTPUT_SIZE)
    out = jax.block_until_ready(out)

    # Reference with the same bf16 operand / f32 accumulate recipe as the kernel.
    w1, b1, w2, b2, w3, b3 = params
    xf = x.reshape(BATCH, INPUT_SIZE).astype(jnp.bfloat16)
    ref = jnp.dot(xf, w1.astype(jnp.bfloat16), preferred_element_type=jnp.float32)
    ref = jnp.maximum(ref + b1, 0.0).astype(jnp.bfloat16)
    ref = jnp.dot(ref, w2.astype(jnp.bfloat16), preferred_element_type=jnp.float32)
    ref = jnp.maximum(ref + b2, 0.0).astype(jnp.bfloat16)
    ref = jnp.dot(ref, w3.astype(jnp.bfloat16), preferred_element_type=jnp.float32) + b3

    assert out.shape == (BATCH, OUTPUT_SIZE)
    assert jnp.allclose(out, ref, atol=1e-2, rtol=1e-2)

    # Loose sanity check against the pure-f32 forward (bf16 rounding tolerance).
    reff = jnp.maximum(x.reshape(BATCH, INPUT_SIZE) @ w1 + b1, 0.0)
    reff = jnp.maximum(reff @ w2 + b2, 0.0)
    reff = reff @ w3 + b3
    assert jnp.allclose(out, reff, atol=5e-2, rtol=5e-2)

    # TODO(synk): train_net/test (AdamW loop, cross-entropy, data loaders) are
    # host-side training utilities, not part of the forward kernel.

    print("KERNEL_OK")
</pallas_src>

<mosaic_0001>
module attributes {stable_mosaic.version = 11 : i64} {
  func.func @_mlp_kernel(%arg0: i32, %arg1: memref<16x784xf32, #tpu.memory_space<vmem>>, %arg2: memref<784x128xbf16, #tpu.memory_space<vmem>>, %arg3: memref<1x128xf32, #tpu.memory_space<vmem>>, %arg4: memref<128x128xbf16, #tpu.memory_space<vmem>>, %arg5: memref<1x128xf32, #tpu.memory_space<vmem>>, %arg6: memref<128x128xbf16, #tpu.memory_space<vmem>>, %arg7: memref<1x128xf32, #tpu.memory_space<vmem>>, %arg8: memref<16x128xf32, #tpu.memory_space<vmem>>) attributes {dimension_semantics = [#tpu.dimension_semantics<parallel>], iteration_bounds = array<i64: 1>, scalar_prefetch = 0 : i64, scratch_operands = 0 : i64, tpu.core_type = #tpu.core_type<tc>, window_params = [{transform_indices = @transform_0, window_bounds = array<i64: 16, 784>}, {pipeline_mode = #tpu.pipeline_mode<synchronous>, transform_indices = @transform_1, window_bounds = array<i64: 784, 128>}, {pipeline_mode = #tpu.pipeline_mode<synchronous>, transform_indices = @transform_2, window_bounds = array<i64: 1, 128>}, {pipeline_mode = #tpu.pipeline_mode<synchronous>, transform_indices = @transform_3, window_bounds = array<i64: 128, 128>}, {pipeline_mode = #tpu.pipeline_mode<synchronous>, transform_indices = @transform_4, window_bounds = array<i64: 1, 128>}, {pipeline_mode = #tpu.pipeline_mode<synchronous>, transform_indices = @transform_5, window_bounds = array<i64: 128, 128>}, {pipeline_mode = #tpu.pipeline_mode<synchronous>, transform_indices = @transform_6, window_bounds = array<i64: 1, 128>}, {transform_indices = @transform_7, window_bounds = array<i64: 16, 128>}]} {
    %c0 = arith.constant 0 : index
    %c0_0 = arith.constant 0 : index
    %0 = vector.load %arg1[%c0, %c0_0] : memref<16x784xf32, #tpu.memory_space<vmem>>, vector<16x784xf32>
    %1 = arith.truncf %0 : vector<16x784xf32> to vector<16x784xbf16>
    %c0_1 = arith.constant 0 : index
    %c0_2 = arith.constant 0 : index
    %2 = vector.load %arg2[%c0_1, %c0_2] : memref<784x128xbf16, #tpu.memory_space<vmem>>, vector<784x128xbf16>
    %cst = arith.constant dense<0.000000e+00> : vector<16x128xf32>
    %3 = tpu.matmul %1, %2, %cst {dimension_numbers = #tpu.dot_dimension_numbers<[1], [0], [0], [1], [0, 0, 1, 1], [], []>} : vector<16x784xbf16>, vector<784x128xbf16>, vector<16x128xf32> -> vector<16x128xf32>
    %c0_3 = arith.constant 0 : index
    %c0_4 = arith.constant 0 : index
    %4 = vector.load %arg3[%c0_3, %c0_4] : memref<1x128xf32, #tpu.memory_space<vmem>>, vector<1x128xf32>
    %5 = vector.broadcast %4 : vector<1x128xf32> to vector<16x128xf32>
    %6 = arith.addf %3, %5 : vector<16x128xf32>
    %cst_5 = arith.constant 0.000000e+00 : f32
    %7 = vector.broadcast %cst_5 : f32 to vector<16x128xf32>
    %8 = arith.maximumf %6, %7 : vector<16x128xf32>
    %9 = arith.truncf %8 : vector<16x128xf32> to vector<16x128xbf16>
    %c0_6 = arith.constant 0 : index
    %c0_7 = arith.constant 0 : index
    %10 = vector.load %arg4[%c0_6, %c0_7] : memref<128x128xbf16, #tpu.memory_space<vmem>>, vector<128x128xbf16>
    %cst_8 = arith.constant dense<0.000000e+00> : vector<16x128xf32>
    %11 = tpu.matmul %9, %10, %cst_8 {dimension_numbers = #tpu.dot_dimension_numbers<[1], [0], [0], [1], [0, 0, 1, 1], [], []>} : vector<16x128xbf16>, vector<128x128xbf16>, vector<16x128xf32> -> vector<16x128xf32>
    %c0_9 = arith.constant 0 : index
    %c0_10 = arith.constant 0 : index
    %12 = vector.load %arg5[%c0_9, %c0_10] : memref<1x128xf32, #tpu.memory_space<vmem>>, vector<1x128xf32>
    %13 = vector.broadcast %12 : vector<1x128xf32> to vector<16x128xf32>
    %14 = arith.addf %11, %13 : vector<16x128xf32>
    %cst_11 = arith.constant 0.000000e+00 : f32
    %15 = vector.broadcast %cst_11 : f32 to vector<16x128xf32>
    %16 = arith.maximumf %14, %15 : vector<16x128xf32>
    %17 = arith.truncf %16 : vector<16x128xf32> to vector<16x128xbf16>
    %c0_12 = arith.constant 0 : index
    %c0_13 = arith.constant 0 : index
    %18 = vector.load %arg6[%c0_12, %c0_13] : memref<128x128xbf16, #tpu.memory_space<vmem>>, vector<128x128xbf16>
    %cst_14 = arith.constant dense<0.000000e+00> : vector<16x128xf32>
    %19 = tpu.matmul %17, %18, %cst_14 {dimension_numbers = #tpu.dot_dimension_numbers<[1], [0], [0], [1], [0, 0, 1, 1], [], []>} : vector<16x128xbf16>, vector<128x128xbf16>, vector<16x128xf32> -> vector<16x128xf32>
    %c0_15 = arith.constant 0 : index
    %c0_16 = arith.constant 0 : index
    %20 = vector.load %arg7[%c0_15, %c0_16] : memref<1x128xf32, #tpu.memory_space<vmem>>, vector<1x128xf32>
    %21 = vector.broadcast %20 : vector<1x128xf32> to vector<16x128xf32>
    %22 = arith.addf %19, %21 : vector<16x128xf32>
    %c0_17 = arith.constant 0 : index
    %c0_18 = arith.constant 0 : index
    %23 = vector.load %arg8[%c0_17, %c0_18] : memref<16x128xf32, #tpu.memory_space<vmem>>, vector<16x128xf32>
    tpu.vector_store %arg8[%c0_17, %c0_18], %22 {strides = array<i32>} : memref<16x128xf32, #tpu.memory_space<vmem>>, vector<16x128xf32>,
    return
  }
  func.func @transform_0(%arg0: i32) -> (i32, i32) {
    %c0_i32 = arith.constant 0 : i32
    %c0_i32_0 = arith.constant 0 : i32
    return %arg0, %c0_i32 : i32, i32
  }
  func.func @transform_1(%arg0: i32) -> (i32, i32) {
    %c0_i32 = arith.constant 0 : i32
    %c0_i32_0 = arith.constant 0 : i32
    %c0_i32_1 = arith.constant 0 : i32
    return %c0_i32, %c0_i32_0 : i32, i32
  }
  func.func @transform_2(%arg0: i32) -> (i32, i32) {
    %c0_i32 = arith.constant 0 : i32
    %c0_i32_0 = arith.constant 0 : i32
    %c0_i32_1 = arith.constant 0 : i32
    return %c0_i32, %c0_i32_0 : i32, i32
  }
  func.func @transform_3(%arg0: i32) -> (i32, i32) {
    %c0_i32 = arith.constant 0 : i32
    %c0_i32_0 = arith.constant 0 : i32
    %c0_i32_1 = arith.constant 0 : i32
    return %c0_i32, %c0_i32_0 : i32, i32
  }
  func.func @transform_4(%arg0: i32) -> (i32, i32) {
    %c0_i32 = arith.constant 0 : i32
    %c0_i32_0 = arith.constant 0 : i32
    %c0_i32_1 = arith.constant 0 : i32
    return %c0_i32, %c0_i32_0 : i32, i32
  }
  func.func @transform_5(%arg0: i32) -> (i32, i32) {
    %c0_i32 = arith.constant 0 : i32
    %c0_i32_0 = arith.constant 0 : i32
    %c0_i32_1 = arith.constant 0 : i32
    return %c0_i32, %c0_i32_0 : i32, i32
  }
  func.func @transform_6(%arg0: i32) -> (i32, i32) {
    %c0_i32 = arith.constant 0 : i32
    %c0_i32_0 = arith.constant 0 : i32
    %c0_i32_1 = arith.constant 0 : i32
    return %c0_i32, %c0_i32_0 : i32, i32
  }
  func.func @transform_7(%arg0: i32) -> (i32, i32) {
    %c0_i32 = arith.constant 0 : i32
    %c0_i32_0 = arith.constant 0 : i32
    return %arg0, %c0_i32 : i32, i32
  }
}

</mosaic_0001>

<bundles_post_ra>
// kernel: mlp_forward.1
= control target key start
LH: loop header
LB: loop body
LE: loop exit
PB: predicated region body
PF: predicated region fallthrough
CT: control target
= control target key end

     0   :  { %12 = vsyncpa [#allocation3], 0  ;;  %s1161_s24 = smov [#allocation2]   ;;  %s1346_s0 = inlined_call_operand.vmem [shape: f32[16,784], index: 0, kind: input, shape index: {}]   ;;  %s1347_s1 = inlined_call_operand.hbm [shape: bf16[784,128], index: 1, kind: input, shape index: {}]   ;;  %s1348_s2 = inlined_call_operand.vmem [shape: f32[1,128], index: 2, kind: input, shape index: {}]   ;;  %s1349_s3 = inlined_call_operand.vmem [shape: bf16[128,128], index: 3, kind: input, shape index: {}]   ;;  %s1350_s4 = inlined_call_operand.vmem [shape: f32[1,128], index: 4, kind: input, shape index: {}]   ;;  %s1351_s5 = inlined_call_operand.vmem [shape: bf16[128,128], index: 5, kind: input, shape index: {}]   ;;  %s1352_s6 = inlined_call_operand.vmem [shape: f32[1,128], index: 6, kind: input, shape index: {}]   ;;  %s1353_s7 = inlined_call_operand.vmem [shape: f32[16,128], index: 7, kind: output, shape index: {}]  }
   0x1   :  { %s20_s25 = sshll.u32 %s1161_s24, 4  ;;  %s1137_s28 = scalar_lea.hbm %s1347_s1, 6272  ;;  %s21_s25 = int_to_ptr.vmem [resolvable:$true] %s20_s25 }
   0x2   :  { %p1138_p0 = scmp.ne.s32.totalorder %s1347_s1, %s1137_s28  ;;  %p1141_p1 = scmp.lt.u32.totalorder %s1137_s28, %s1347_s1 }
   0x4   :  { %p1143_p2 = pnand %p1141_p1, %p1138_p0 }
   0x6   :  { %1146 = shalt.err (!%p1143_p2)
}
   0x7   :  { %s1147_s10 = scalar_lea.vmem %s21_s25, 6272  ;;  %p1152_p4 = scmp.lt.s32.totalorder %s21_s25, %s21_s25 }
   0x8   :  { %p1148_p3 = scmp.ne.s32.totalorder %s21_s25, %s1147_s10  ;;  %p1153_p5 = scmp.lt.s32.totalorder %s1147_s10, %s1147_s10 }
   0xa   :  { %p1154_p6 = por %p1153_p5, %p1152_p4 }
   0xc   :  { %p1155_p7 = pnand %p1154_p6, %p1148_p3 }
   0xe   :  { %1158 = shalt.err (!%p1155_p7)
}
   0xf   :  { %s1162_s11 = smov 64   ;;  %s1163_s12 = smov 4  }
  0x10   :  { %26 = dma.hbm_to_vmem [thread:$0]  %s1347_s1, 6272, %s21_s25, [#allocation3], %s1162_s11, %s1162_s11, %s1163_s12  }
  0x11   :  { %1159 = dma.done.wait [#allocation3], 6272  }
  0x12   :  { %1160 = vsyncadd [#allocation3], 4294961024  ;;  %v1072_v0 = vld [vmem:[#allocation2 + $0x40] sm:$0xff]   ;;  %v1076_v4 = vld [vmem:[#allocation2 + $0x48] sm:$0xff]   ;;  %v1164_v43 = vmov 0.0   ;;  %vm1165_vm0 = vmmov 0  }
  0x13   :  { %v1073_v1 = vld [vmem:[#allocation2] sm:$0xff]   ;;  %935 = vmatprep.subr.bf16.mxu0 %v1072_v0  ;;  %v1077_v5 = vld [vmem:[#allocation2 + $0x8] sm:$0xff]   ;;  %v1080_v8 = vld [vmem:[#allocation2 + $0x50] sm:$0xff]   ;;  %vm461_vm1 = vcmask 130048  }
  0x14   :  { %v1074_v2 = vld [vmem:[#allocation2 + $0xc0] sm:$0xff]   ;;  %936 = vmatpush3.bf16.msra.mxu0 %v1073_v1  ;;  %v1078_v6 = vld [vmem:[#allocation2 + $0xc8] sm:$0xff]   ;;  %v1081_v9 = vld [vmem:[#allocation2 + $0x10] sm:$0xff]  }
  0x15   :  { %v1075_v3 = vld [vmem:[#allocation2 + $0x80] sm:$0xff]   ;;  %957 = vmatprep.subr.bf16.mxu1 %v1074_v2  ;;  %937 = vmatprep.subr.bf16.mxu0 %v1076_v4  ;;  %v1079_v7 = vld [vmem:[#allocation2 + $0x88] sm:$0xff]   ;;  %v1082_v10 = vld [vmem:[#allocation2 + $0xd0] sm:$0xff]  }
  0x16   :  { %958 = vmatpush3.bf16.msra.mxu1 %v1075_v3  ;;  %v1083_v11 = vld [vmem:[#allocation2 + $0x90] sm:$0xff]   ;;  %v1084_v12 = vld [vmem:[#allocation2 + $0x58] sm:$0xff]   ;;  %v1088_v16 = vld [vmem:[#allocation2 + $0x60] sm:$0xff]  }
  0x17   :  { %959 = vmatprep.subr.bf16.mxu1 %v1078_v6  ;;  %v1085_v13 = vld [vmem:[#allocation2 + $0x18] sm:$0xff]   ;;  %v1089_v17 = vld [vmem:[#allocation2 + $0x20] sm:$0xff]   ;;  %v1092_v20 = vld [vmem:[#allocation2 + $0x68] sm:$0xff]  }
  0x18   :  { %938 = vmatpush3.bf16.msra.mxu0 %v1077_v5  ;;  %v1086_v14 = vld [vmem:[#allocation2 + $0xd8] sm:$0xff]   ;;  %v1090_v18 = vld [vmem:[#allocation2 + $0xe0] sm:$0xff]   ;;  %v1093_v21 = vld [vmem:[#allocation2 + $0x28] sm:$0xff]  }
  0x19   :  { %939 = vmatprep.subr.bf16.mxu0 %v1080_v8  ;;  %v1087_v15 = vld [vmem:[#allocation2 + $0x98] sm:$0xff]   ;;  %v1091_v19 = vld [vmem:[#allocation2 + $0xa0] sm:$0xff]   ;;  %v1094_v22 = vld [vmem:[#allocation2 + $0xe8] sm:$0xff]  }
  0x1a   :  { %960 = vmatpush3.bf16.msra.mxu1 %v1079_v7  ;;  %v1095_v23 = vld [vmem:[#allocation2 + $0xa8] sm:$0xff]   ;;  %v1096_v24 = vld [vmem:[#allocation2 + $0x70] sm:$0xff]   ;;  %v1100_v28 = vld [vmem:[#allocation2 + $0x78] sm:$0xff]  }
  0x1b   :  { %961 = vmatprep.subr.bf16.mxu1 %v1082_v10  ;;  %v1097_v25 = vld [vmem:[#allocation2 + $0x30] sm:$0xff]   ;;  %v1101_v29 = vld [vmem:[#allocation2 + $0x38] sm:$0xff]   ;;  %v42_v31 = vld [vmem:[%s1346_s0 + $0x8] sm:$0xff] }
  0x1c   :  { %940 = vmatpush3.bf16.msra.mxu0 %v1081_v9  ;;  %v1098_v26 = vld [vmem:[#allocation2 + $0xf0] sm:$0xff]   ;;  %v1102_v30 = vld [vmem:[#allocation2 + $0xf8] sm:$0xff]   ;;  %v49_v32 = vld [vmem:[%s1346_s0 + $0x40] sm:$0xff] }
  0x1d   :  { %941 = vmatprep.subr.bf16.mxu0 %v1084_v12  ;;  %v1099_v27 = vld [vmem:[#allocation2 + $0xb0] sm:$0xff]   ;;  %v56_v33 = vpack.c.bf16 %v49_v32, %v42_v31  ;;  %v1103_v34 = vld [vmem:[#allocation2 + $0xb8] sm:$0xff]   ;;  %v41_v35 = vld [vmem:[%s1346_s0] sm:$0xff] }
  0x1e   :  { %962 = vmatpush3.bf16.msra.mxu1 %v1083_v11  ;;  %v48_v36 = vld [vmem:[%s1346_s0 + $0x38] sm:$0xff]  ;;  %v1104_v38 = vld [vmem:[#allocation2 + $0x140] sm:$0xff]   ;;  %v51_v40 = vld [vmem:[%s1346_s0 + $0x50] sm:$0xff] }
  0x1f   :  { %963 = vmatprep.subr.bf16.mxu1 %v1086_v14  ;;  %497 = vmatprep.mubr.bf16.mxu0 %v56_v33  ;;  %v55_v37 = vpack.c.bf16 %v48_v36, %v41_v35  ;;  %v44_v39 = vld [vmem:[%s1346_s0 + $0x18] sm:$0xff]  ;;  %v1105_v42 = vld [vmem:[#allocation2 + $0x100] sm:$0xff]   ;;  %v43_v44 = vld [vmem:[%s1346_s0 + $0x10] sm:$0xff] }
  0x20   :  { %942 = vmatpush3.bf16.msra.mxu0 %v1085_v13  ;;  %v58_v41 = vpack.c.bf16 %v51_v40, %v44_v39  ;;  %v50_v45 = vld [vmem:[%s1346_s0 + $0x48] sm:$0xff]  ;;  %v1108_v49 = vld [vmem:[#allocation2 + $0x150] sm:$0xff]   ;;  %v1110_v51 = vld [vmem:[#allocation2 + $0x158] sm:$0xff]  }
  0x21   :  { %943 = vmatprep.subr.bf16.mxu0 %v1088_v16  ;;  %v57_v46 = vpack.c.bf16 %v50_v45, %v43_v44  ;;  %v1106_v47 = vld [vmem:[#allocation2 + $0x148] sm:$0xff]   ;;  %v1109_v50 = vld [vmem:[#allocation2 + $0x110] sm:$0xff]   ;;  %v1111_v52 = vld [vmem:[#allocation2 + $0x118] sm:$0xff]  }
  0x22   :  { %964 = vmatpush3.bf16.msra.mxu1 %v1087_v15  ;;  %538 = vmatprep.mubr.bf16.mxu1 %v58_v41  ;;  %v1107_v48 = vld [vmem:[#allocation2 + $0x108] sm:$0xff]   ;;  %v1112_v53 = vld [vmem:[#allocation2 + $0x160] sm:$0xff]   ;;  %v1116_v59 = vld [vmem:[#allocation2 + $0x170] sm:$0xff]  }
  0x23   :  { %965 = vmatprep.subr.bf16.mxu1 %v1090_v18  ;;  %v1113_v54 = vld [vmem:[#allocation2 + $0x120] sm:$0xff]   ;;  %v1114_v55 = vld [vmem:[#allocation2 + $0x168] sm:$0xff]   ;;  %v47_v62 = vld [vmem:[%s1346_s0 + $0x30] sm:$0xff] }
  0x24   :  { %944 = vmatpush3.bf16.msra.mxu0 %v1089_v17  ;;  %v1120_v56 = vld [vmem:[#allocation2 + $0x180] sm:$0xff]   ;;  %v46_v57 = vld [vmem:[%s1346_s0 + $0x28] sm:$0xff]  ;;  %v1117_v1 = vld [vmem:[#allocation2 + $0x130] sm:$0xff]  }
  0x25   :  { %945 = vmatprep.subr.bf16.mxu0 %v1092_v20  ;;  %v1115_v58 = vld [vmem:[#allocation2 + $0x128] sm:$0xff]   ;;  %v53_v60 = vld [vmem:[%s1346_s0 + $0x60] sm:$0xff]  ;;  %v1118_v2 = vld [vmem:[#allocation2 + $0x178] sm:$0xff]  }
  0x26   :  { %966 = vmatpush3.bf16.msra.mxu1 %v1091_v19  ;;  %v60_v61 = vpack.c.bf16 %v53_v60, %v46_v57  ;;  %v54_v63 = vld [vmem:[%s1346_s0 + $0x68] sm:$0xff]  ;;  %v1119_v3 = vld [vmem:[#allocation2 + $0x138] sm:$0xff]   ;;  %v45_v4 = vld [vmem:[%s1346_s0 + $0x20] sm:$0xff] }
  0x27   :  { %967 = vmatprep.subr.bf16.mxu1 %v1094_v22  ;;  %v61_v0 = vpack.c.bf16 %v54_v63, %v47_v62  ;;  %v52_v5 = vld [vmem:[%s1346_s0 + $0x58] sm:$0xff]  ;;  %v1121_v7 = vld [vmem:[%s1349_s3] sm:$0xff]   ;;  %v1122_v8 = vld [vmem:[%s1349_s3 + $0x8] sm:$0xff]  }
  0x28   :  { %946 = vmatpush3.bf16.msra.mxu0 %v1093_v21  ;;  %v59_v6 = vpack.c.bf16 %v52_v5, %v45_v4  ;;  %v1123_v9 = vld [vmem:[%s1349_s3 + $0x10] sm:$0xff]   ;;  %v1124_v10 = vld [vmem:[%s1349_s3 + $0x18] sm:$0xff]   ;;  %v1125_v11 = vld [vmem:[%s1349_s3 + $0x20] sm:$0xff]  }
  0x29   :  { %947 = vmatprep.subr.bf16.mxu0 %v1096_v24  ;;  %v1126_v12 = vld [vmem:[%s1349_s3 + $0x28] sm:$0xff]   ;;  %v1127_v13 = vld [vmem:[%s1349_s3 + $0x30] sm:$0xff]   ;;  %v1128_v14 = vld [vmem:[%s1349_s3 + $0x38] sm:$0xff]  }
  0x2a   :  { %968 = vmatpush3.bf16.msra.mxu1 %v1095_v23  ;;  %v1129_v15 = vld [vmem:[%s1351_s5] sm:$0xff]   ;;  %v1130_v16 = vld [vmem:[%s1351_s5 + $0x8] sm:$0xff]   ;;  %v1131_v17 = vld [vmem:[%s1351_s5 + $0x10] sm:$0xff]  }
  0x2b   :  { %969 = vmatprep.subr.bf16.mxu1 %v1098_v26  ;;  %v1132_v18 = vld [vmem:[%s1351_s5 + $0x18] sm:$0xff]   ;;  %v1133_v19 = vld [vmem:[%s1351_s5 + $0x20] sm:$0xff]   ;;  %v1134_v20 = vld [vmem:[%s1351_s5 + $0x28] sm:$0xff]  }
  0x2c   :  { %948 = vmatpush3.bf16.msra.mxu0 %v1097_v25  ;;  %v866_v22 = vld [vmem:[%s1348_s2] ss:$0 sm:$0xff]  ;;  %v1136_v57 = vld [vmem:[%s1351_s5 + $0x38] sm:$0xff]  }
  0x2d   :  { %949 = vmatprep.subr.bf16.mxu0 %v1100_v28 }
  0x2e   :  { %970 = vmatpush3.bf16.msra.mxu1 %v1099_v27 }
  0x2f   :  { %971 = vmatprep.subr.bf16.mxu1 %v1102_v30 }
  0x30   :  { %950 = vmatpush3.bf16.msra.mxu0 %v1101_v29 }
  0x31   :  { %979 = vmatprep.subr.bf16.mxu0 %v1104_v38 }
  0x32   :  { %972 = vmatpush3.bf16.msra.mxu1 %v1103_v34 }
  0x33   :  { %1021 = vmatprep.subr.bf16.mxu1 %v1164_v43  ;;  %498 = vmatmul.mubr.bf16.vlgmr.msra.gmra.mrb[0].mxu0 %v55_v37 }
  0x34   :  { %980 = vmatpush3.bf16.msra.mxu0 %v1105_v42  ;;  %579 = vmatprep.mubr.bf16.mxu0 %v60_v61 }
  0x35   :  { %539 = vmatmul.mubr.bf16.vlgmr.msra.gmra.mrb[0].mxu1 %v57_v46  ;;  %981 = vmatprep.subr.bf16.mxu0 %v1106_v47 }
  0x36   :  { %1023 = vmatprep.mubr.msk.bf16.mxu1 %vm1165_vm0, %v1164_v43  ;;  %1022 = vmatpush3.bf16.msra.mxu1 %v1120_v56  ;;  %v1135_v56 = vld [vmem:[%s1351_s5 + $0x30] sm:$0xff]  }
  0x37   :  { %1027 = vmatprep.subr.bf16.mxu1 %v1164_v43 }
  0x38   :  { %982 = vmatpush3.bf16.msra.mxu0 %v1107_v48 }
  0x39   :  { %983 = vmatprep.subr.bf16.mxu0 %v1108_v49 }
  0x3c   :  { %984 = vmatpush3.bf16.msra.mxu0 %v1109_v50 }
  0x3d   :  { %985 = vmatprep.subr.bf16.mxu0 %v1110_v51  ;;  %1024 = vmatmul.mubr.msk.bf16.vlgmr.msra.gmra.mrb[4].mxu1 %vm461_vm1, %v61_v0 }
  0x3e   :  { %1043 = vmatprep.mubr.msk.bf16.mxu1 %vm1165_vm0, %v1164_v43  ;;  %1028 = vmatpush3.bf16.msra.mxu1 %v1121_v7 }
  0x3f   :  { %1029 = vmatprep.subr.bf16.mxu1 %v1164_v43 }
  0x40   :  { %986 = vmatpush3.bf16.msra.mxu0 %v1111_v52 }
  0x41   :  { %987 = vmatprep.subr.bf16.mxu0 %v1112_v53 }
  0x42   :  { %1030 = vmatpush3.bf16.msra.mxu1 %v1122_v8 }
  0x43   :  { %1031 = vmatprep.subr.bf16.mxu1 %v1164_v43 }
  0x44   :  { %988 = vmatpush3.bf16.msra.mxu0 %v1113_v54 }
  0x45   :  { %989 = vmatprep.subr.bf16.mxu0 %v1114_v55 }
  0x46   :  { %1032 = vmatpush3.bf16.msra.mxu1 %v1123_v9 }
  0x47   :  { %1033 = vmatprep.subr.bf16.mxu1 %v1164_v43 }
  0x48   :  { %990 = vmatpush3.bf16.msra.mxu0 %v1115_v58  ;;  %v917_v58 = vld [vmem:[%s1350_s4] ss:$0 sm:$0xff] }
  0x49   :  { %991 = vmatprep.subr.bf16.mxu0 %v1116_v59 }
  0x4a   :  { %1034 = vmatpush3.bf16.msra.mxu1 %v1124_v10 }
  0x4b   :  { %1035 = vmatprep.subr.bf16.mxu1 %v1164_v43 }
  0x4c   :  { %992 = vmatpush3.bf16.msra.mxu0 %v1117_v1 }
  0x4d   :  { %993 = vmatprep.subr.bf16.mxu0 %v1118_v2 }
  0x4e   :  { %1036 = vmatpush3.bf16.msra.mxu1 %v1125_v11 }
  0x4f   :  { %1037 = vmatprep.subr.bf16.mxu1 %v1164_v43 }
  0x50   :  { %994 = vmatpush3.bf16.msra.mxu0 %v1119_v3 }
  0x51   :  { %1047 = vmatprep.subr.bf16.mxu0 %v1164_v43 }
  0x52   :  { %1038 = vmatpush3.bf16.msra.mxu1 %v1126_v12 }
  0x53   :  { %580 = vmatmul.mubr.bf16.vlgmr.msra.gmra.mrb[4].mxu0 %v59_v6  ;;  %1039 = vmatprep.subr.bf16.mxu1 %v1164_v43 }
  0x54   :  { %1063 = vmatprep.mubr.msk.bf16.mxu0 %vm1165_vm0, %v1164_v43  ;;  %1048 = vmatpush3.bf16.msra.mxu0 %v1129_v15 }
  0x55   :  { %1049 = vmatprep.subr.bf16.mxu0 %v1164_v43 }
  0x56   :  { %1040 = vmatpush3.bf16.msra.mxu1 %v1127_v13 }
  0x57   :  { %1041 = vmatprep.subr.bf16.mxu1 %v1164_v43 }
  0x58   :  { %1050 = vmatpush3.bf16.msra.mxu0 %v1130_v16 }
  0x59   :  { %1051 = vmatprep.subr.bf16.mxu0 %v1164_v43 }
  0x5a   :  { %1042 = vmatpush3.bf16.msra.mxu1 %v1128_v14 }
  0x5c   :  { %1052 = vmatpush3.bf16.msra.mxu0 %v1131_v17 }
  0x5d   :  { %1053 = vmatprep.subr.bf16.mxu0 %v1164_v43 }
  0x60   :  { %1054 = vmatpush3.bf16.msra.mxu0 %v1132_v18 }
  0x61   :  { %1055 = vmatprep.subr.bf16.mxu0 %v1164_v43 }
  0x64   :  { %1056 = vmatpush3.bf16.msra.mxu0 %v1133_v19 }
  0x65   :  { %1057 = vmatprep.subr.bf16.mxu0 %v1164_v43 }
  0x68   :  { %1058 = vmatpush3.bf16.msra.mxu0 %v1134_v20 }
  0x69   :  { %1059 = vmatprep.subr.bf16.mxu0 %v1164_v43 }
  0x6c   :  { %1060 = vmatpush3.bf16.msra.mxu0 %v1135_v56 }
  0x6d   :  { %1061 = vmatprep.subr.bf16.mxu0 %v1164_v43  ;;  %v926_v43 = vld [vmem:[%s1352_s6] ss:$0 sm:$0xff] }
  0x70   :  { %1062 = vmatpush3.bf16.msra.mxu0 %v1136_v57 }
 0x106   :  { %v951_v21 = vpop.f32.mrb[0].mxu0 }
 0x107   :  { %v952_v23 = vpop.f32.mrb[1].mxu0 }
 0x108   :  { %v953_v24 = vadd.f32 %v952_v23, %v951_v21  ;;  %v954_v25 = vpop.f32.mrb[2].mxu0  ;;  %v973_v26 = vpop.f32.mrb[0].mxu1 }
 0x109   :  { %v955_v27 = vpop.f32.mrb[3].mxu0  ;;  %v974_v30 = vpop.f32.mrb[1].mxu1 }
 0x10a   :  { %v500_v28 = vadd.f32 %v953_v24, %v866_v22  ;;  %v956_v29 = vadd.f32 %v955_v27, %v954_v25  ;;  %v975_v31 = vadd.f32 %v974_v30, %v973_v26  ;;  %v976_v32 = vpop.f32.mrb[2].mxu1 }
 0x10b   :  { %v977_v34 = vpop.f32.mrb[3].mxu1 }
 0x10c   :  { %v503_v33 = vadd.f32 %v956_v29, %v866_v22  ;;  %v541_v35 = vadd.f32 %v975_v31, %v500_v28  ;;  %v978_v36 = vadd.f32 %v977_v34, %v976_v32 }
 0x10e   :  { %v544_v37 = vadd.f32 %v978_v36, %v503_v33 }
 0x110   :  { %v622_v38 = vpop.f32.mrb[4].mxu1 }
 0x111   :  { %v1025_v39 = vpop.f32.mrb[5].mxu1 }
 0x112   :  { %v625_v40 = vpop.f32.mrb[6].mxu1 }
 0x113   :  { %v1026_v41 = vpop.f32.mrb[7].mxu1 }
 0x126   :  { %v995_v42 = vpop.f32.mrb[4].mxu0 }
 0x127   :  { %v996_v44 = vpop.f32.mrb[5].mxu0 }
 0x128   :  { %v997_v45 = vadd.f32 %v996_v44, %v995_v42  ;;  %v998_v46 = vpop.f32.mrb[6].mxu0 }
 0x129   :  { %v999_v47 = vpop.f32.mrb[7].mxu0 }
 0x12a   :  { %v582_v48 = vadd.f32 %v997_v45, %v541_v35  ;;  %v1000_v49 = vadd.f32 %v999_v47, %v998_v46 }
 0x12c   :  { %v623_v50 = vadd.f32 %v622_v38, %v582_v48  ;;  %v585_v51 = vadd.f32 %v1000_v49, %v544_v37 }
 0x12e   :  { %v626_v52 = vadd.f32 %v625_v40, %v585_v51  ;;  %v629_v53 = vmax.f32 %v623_v50, 0.0 }
 0x130   :  { %v630_v54 = vmax.f32 %v626_v52, 0.0 }
 0x132   :  { %v631_v55 = vpack.c.bf16 %v630_v54, %v629_v53 }
 0x134   :  { %1044 = vmatmul.mubr.bf16.vlgmr.msra.gmra.mrb[8].mxu1 %v631_v55 }
 0x207   :  { %v737_v59 = vpop.f32.mrb[8].mxu1 }
 0x208   :  { %v738_v60 = vadd.f32 %v917_v58, %v737_v59  ;;  %v1045_v61 = vpop.f32.mrb[9].mxu1 }
 0x209   :  { %v740_v62 = vpop.f32.mrb[10].mxu1 }
 0x20a   :  { %v741_v63 = vadd.f32 %v917_v58, %v740_v62  ;;  %v1046_v0 = vpop.f32.mrb[11].mxu1  ;;  %v744_v1 = vmax.f32 %v738_v60, 0.0 }
 0x20c   :  { %v745_v2 = vmax.f32 %v741_v63, 0.0 }
 0x20e   :  { %v746_v3 = vpack.c.bf16 %v745_v2, %v744_v1 }
 0x210   :  { %1064 = vmatmul.mubr.bf16.vlgmr.msra.gmra.mrb[8].mxu0 %v746_v3 }
 0x2e3   :  { %v852_v4 = vpop.f32.mrb[8].mxu0 }
 0x2e4   :  { %v853_v5 = vadd.f32 %v926_v43, %v852_v4  ;;  %v1065_v6 = vpop.f32.mrb[9].mxu0 }
 0x2e5   :  { %v855_v7 = vpop.f32.mrb[10].mxu0 }
 0x2e6   :  { %859 = vst [vmem:[%s1353_s7] sm:$0xff] %v853_v5  ;;  %v856_v8 = vadd.f32 %v926_v43, %v855_v7  ;;  %v1066_v9 = vpop.f32.mrb[11].mxu0 }
 0x2e8   :  { %860 = vst [vmem:[%s1353_s7 + $0x8] sm:$0xff] %v856_v8 }
 0x2e9   :  { %865 = vsyncpa [#allocation3], 1 }

</bundles_post_ra>
